<compile_context>
chip_gen: v6e
topology: v6e:2x2x1
jax: 0.10.0
libtpu: 0.0.40
codegen_flags: <defaults>
</compile_context>

<pallas_src>
import functools

import jax
import jax.numpy as jnp
from jax.experimental import pallas as pl
from jax.experimental.pallas import tpu as pltpu


def _vmem_limit_bytes():
    """Generation-aware scoped-VMEM limit (v7x: 64 MiB, v5e/v6e: 128 MiB)."""
    try:
        cap = int(pltpu.get_tpu_info().vmem_capacity_bytes)
    except Exception:  # conservative fallback
        cap = 128 * 1024 * 1024
    return min((cap * 3) // 4, 96 * 1024 * 1024)


def _row_tile(m, cap=1024):
    """Multiple-of-8 row tile <= cap; caller pads rows up to a multiple."""
    if m <= cap:
        return ((m + 7) // 8) * 8
    for t in range(cap - cap % 8, 7, -8):
        if m % t == 0:
            return t
    return cap - cap % 8


# ----------------------------------------------------------------------------
# Kernel 1: fused q|k|v projection (qk scale pre-folded into the q weights).
# ----------------------------------------------------------------------------
def _qkv_kernel(C, x_ref, w_ref, b_ref, q_ref, k_ref, v_ref):
    # MXU in the input's native dtype; accumulate in f32.
    y = jnp.dot(x_ref[...], w_ref[...],
                preferred_element_type=jnp.float32) + b_ref[...]
    q_ref[...] = y[:, :C].astype(q_ref.dtype)
    k_ref[...] = y[:, C:2 * C].astype(k_ref.dtype)
    v_ref[...] = y[:, 2 * C:].astype(v_ref.dtype)


def _qkv_proj(x_flat, w3, b3, vmem_limit):
    M, C = x_flat.shape
    tm = _row_tile(M)
    Mp = ((M + tm - 1) // tm) * tm
    if Mp != M:
        x_flat = jnp.pad(x_flat, ((0, Mp - M), (0, 0)))
    kernel = functools.partial(_qkv_kernel, C)
    q, k, v = pl.pallas_call(
        kernel,
        out_shape=(jax.ShapeDtypeStruct((Mp, C), x_flat.dtype),) * 3,
        grid_spec=pltpu.PrefetchScalarGridSpec(
            num_scalar_prefetch=0,
            grid=(Mp // tm,),
            in_specs=[
                pl.BlockSpec((tm, C), lambda i: (i, 0)),
                pl.BlockSpec((C, 3 * C), lambda i: (0, 0)),
                pl.BlockSpec((1, 3 * C), lambda i: (0, 0)),
            ],
            out_specs=[
                pl.BlockSpec((tm, C), lambda i: (i, 0)),
                pl.BlockSpec((tm, C), lambda i: (i, 0)),
                pl.BlockSpec((tm, C), lambda i: (i, 0)),
            ],
        ),
        compiler_params=pltpu.CompilerParams(
            dimension_semantics=("parallel",),
            vmem_limit_bytes=vmem_limit),
    )(x_flat, w3, b3)
    if Mp != M:
        q, k, v = q[:M], k[:M], v[:M]
    return q, k, v


# ----------------------------------------------------------------------------
# Kernel 2: rolling-halo neighborhood gather + online-softmax center attention
#           + fused output projection.  Grid = (B, D); D carries ring state.
# ----------------------------------------------------------------------------
def _attn_proj_kernel(D, H, W, C, nhp, ksz, pad,
                      q_ref, k_hbm, v_hbm, sel_ref, selT_ref, wp_ref, bp_ref,
                      o_ref, k_ring, v_ring, sems):
    Hp, Wp = H + 2 * pad, W + 2 * pad
    HW = H * W
    R = ksz + 1                       # ring depth: ksz live slabs + 1 prefetch
    b = pl.program_id(0)
    d = pl.program_id(1)

    def _start(slab, slot):
        pltpu.make_async_copy(k_hbm.at[b, slab], k_ring.at[slot],
                              sems.at[0, slot]).start()
        pltpu.make_async_copy(v_hbm.at[b, slab], v_ring.at[slot],
                              sems.at[1, slot]).start()

    def _wait(slot):
        pltpu.make_async_copy(k_hbm.at[b, 0], k_ring.at[slot],
                              sems.at[0, slot]).wait()
        pltpu.make_async_copy(v_hbm.at[b, 0], v_ring.at[slot],
                              sems.at[1, slot]).wait()

    # ---- rolling halo ring buffer over the (padded) depth axis -------------
    @pl.when(d == 0)
    def _prime():
        for i in range(ksz):                 # slabs 0..ksz-1 for this step
            _start(i, i)
        if D >= 2:                           # prefetch slab `ksz` for d == 1
            _start(ksz, ksz % R)
        for i in range(ksz):
            _wait(i)

    @pl.when(d > 0)
    def _steady_wait():                      # slab prefetched by step d-1
        _wait((d + ksz - 1) % R)

    @pl.when(jnp.logical_and(d > 0, d < D - 1))
    def _steady_prefetch():                  # slab needed by step d+1
        _start(d + ksz, (d + ksz) % R)

    # ---- online-softmax center attention over the ksz^3 offsets ------------
    q2 = q_ref[...]                          # (HW, C), native dtype
    sel = sel_ref[...]                       # (C, nhp) 0/1 head selector
    selT = selT_ref[...]                     # (nhp, C) f32

    m = jnp.full((HW, nhp), -jnp.inf, jnp.float32)
    l = jnp.zeros((HW, nhp), jnp.float32)
    acc = jnp.zeros((HW, C), jnp.float32)

    for i in range(ksz):                     # depth offsets
        slot = (d + i) % R
        kslab = k_ring[slot]                 # (Hp, Wp, C)
        vslab = v_ring[slot]
        for kw in range(ksz):                # hoisted sublane (W) shift
            kfl = kslab[:, kw:kw + W, :].reshape(Hp * W, C)
            vfl = vslab[:, kw:kw + W, :].reshape(Hp * W, C)
            for kh in range(ksz):            # contiguous row window (cheap)
                r0 = kh * W
                kwin = kfl[r0:r0 + HW, :]
                vwin = vfl[r0:r0 + HW, :]
                # per-head scores on the MXU via the 0/1 selector
                s_j = jnp.dot(q2 * kwin, sel,
                              preferred_element_type=jnp.float32)  # (HW, nhp)
                m_new = jnp.maximum(m, s_j)
                alpha = jnp.exp(m - m_new)
                p = jnp.exp(s_j - m_new)
                l = alpha * l + p
                # head -> channel expansion on the MXU
                alpha_c = jnp.dot(alpha, selT,
                                  preferred_element_type=jnp.float32)
                p_c = jnp.dot(p, selT, preferred_element_type=jnp.float32)
                acc = alpha_c * acc + (p_c.astype(vwin.dtype)
                                       * vwin).astype(jnp.float32)
                m = m_new

    # exact softmax normalisation (tiny (HW, nhp) tensor)
    inv_c = jnp.dot(1.0 / l, selT, preferred_element_type=jnp.float32)

    # ---- fused output projection (MXU fed in the weight dtype) -------------
    y = jnp.dot((acc * inv_c).astype(wp_ref.dtype), wp_ref[...],
                preferred_element_type=jnp.float32)
    y = y + bp_ref[...].astype(jnp.float32)
    o_ref[...] = y.astype(o_ref.dtype)


# ----------------------------------------------------------------------------
# Wrapper
# ----------------------------------------------------------------------------
def center_attention_3d(x, D, H, W, params, *, num_heads=1, kernel_size=3,
                        stride=1, padding=True, qk_scale=None):
    wq, bq, wkv, bkv, wp, bp = params
    B, N, C = x.shape
    assert N == D * H * W
    assert C % num_heads == 0
    hc = C // num_heads
    scale = qk_scale if qk_scale is not None else float(hc) ** (-0.5)
    pad = kernel_size // 2 if padding else 0
    pd = (D + 2 * pad - kernel_size) // stride + 1
    ph = (H + 2 * pad - kernel_size) // stride + 1
    pw = (W + 2 * pad - kernel_size) // stride + 1
    # The PyTorch module's q reshape silently requires num_patch == N.
    assert stride == 1 and pd == D and ph == H and pw == W, \
        "CenterAttention3D requires num_patch == N (stride=1, padding=True)"

    vmem_limit = _vmem_limit_bytes()

    # --- kernel 1: fused q|k|v projection (qk scale folded into q) ----------
    w3 = jnp.concatenate([wq * scale, wkv], axis=1)            # (C, 3C)
    b3 = jnp.concatenate([bq * scale, bkv]).reshape(1, 3 * C)
    q_flat, k_flat, v_flat = _qkv_proj(x.reshape(B * N, C), w3, b3, vmem_limit)

    # --- glue: ONE zero-pad of k/v (no 27x unfold blow-up) ------------------
    # TODO(synk): this pad is still one extra HBM round trip of k/v.
    spat_pad = ((0, 0), (pad, pad), (pad, pad), (pad, pad), (0, 0))
    k_pad = jnp.pad(k_flat.reshape(B, D, H, W, C), spat_pad)
    v_pad = jnp.pad(v_flat.reshape(B, D, H, W, C), spat_pad)
    q4 = q_flat.reshape(B, D, H * W, C)

    # 0/1 head selector, heads padded to a multiple of 8 (padded heads are
    # zero columns/rows -> contribute nothing).
    nhp = ((num_heads + 7) // 8) * 8
    head_of = jnp.arange(C, dtype=jnp.int32) // hc
    sel_bool = head_of[:, None] == jnp.arange(nhp, dtype=jnp.int32)[None, :]
    sel = sel_bool.astype(x.dtype)                             # (C, nhp)
    selT = sel_bool.T.astype(jnp.float32)                      # (nhp, C)

    # --- kernel 2: rolling-halo gather + online attention + projection ------
    ksz = kernel_size
    Hp, Wp = H + 2 * pad, W + 2 * pad
    HW = H * W
    R = ksz + 1
    kernel = functools.partial(_attn_proj_kernel, D, H, W, C, nhp, ksz, pad)

    out4 = pl.pallas_call(
        kernel,
        out_shape=jax.ShapeDtypeStruct((B, D, HW, C), x.dtype),
        grid_spec=pltpu.PrefetchScalarGridSpec(
            num_scalar_prefetch=0,
            grid=(B, D),
            in_specs=[
                pl.BlockSpec((None, None, HW, C), lambda b, d: (b, d, 0, 0)),
                pl.BlockSpec(memory_space=pl.ANY),   # k_pad (manual ring DMA)
                pl.BlockSpec(memory_space=pl.ANY),   # v_pad (manual ring DMA)
                pl.BlockSpec((C, nhp), lambda b, d: (0, 0)),
                pl.BlockSpec((nhp, C), lambda b, d: (0, 0)),
                pl.BlockSpec((C, C), lambda b, d: (0, 0)),
                pl.BlockSpec((1, C), lambda b, d: (0, 0)),
            ],
            out_specs=pl.BlockSpec((None, None, HW, C),
                                   lambda b, d: (b, d, 0, 0)),
            scratch_shapes=[
                pltpu.VMEM((R, Hp, Wp, C), k_pad.dtype),
                pltpu.VMEM((R, Hp, Wp, C), v_pad.dtype),
                pltpu.SemaphoreType.DMA((2, R)),
            ],
        ),
        compiler_params=pltpu.CompilerParams(
            # D carries the ring-buffer state -> must stay "arbitrary";
            # B keeps megacore sharding.
            dimension_semantics=("parallel", "arbitrary"),
            vmem_limit_bytes=vmem_limit),
    )(q4, k_pad, v_pad, sel, selT, wp, bp.reshape(1, C))

    return out4.reshape(B, N, C)


# ----------------------------------------------------------------------------
# Pure-JAX reference (mirrors the PyTorch forward) for correctness checking
# ----------------------------------------------------------------------------
def reference(x, D, H, W, params, *, num_heads=1, kernel_size=3, stride=1,
              padding=True):
    wq, bq, wkv, bkv, wp, bp = params
    B, N, C = x.shape
    hc = C // num_heads
    scale = float(hc) ** (-0.5)
    pad = kernel_size // 2 if padding else 0
    K3 = kernel_size ** 3
    q = (x @ wq + bq) * scale
    kv = x @ wkv + bkv
    kk, vv = kv[..., :C], kv[..., C:]

    def unfold(t):
        t = t.reshape(B, D, H, W, C)
        tp = jnp.pad(t, ((0, 0), (pad, pad), (pad, pad), (pad, pad), (0, 0)))
        wins = []
        for kd in range(kernel_size):
            for kh in range(kernel_size):
                for kw in range(kernel_size):
                    wins.append(tp[:, kd:kd + D, kh:kh + H, kw:kw + W, :])
        return jnp.stack(wins, axis=4).reshape(B, N, K3, num_heads, hc)

    ku, vu = unfold(kk), unfold(vv)
    qh = q.reshape(B, N, num_heads, hc)
    s = jnp.einsum('bnhd,bnkhd->bnhk', qh, ku)
    p = jax.nn.softmax(s, axis=-1)
    o = jnp.einsum('bnhk,bnkhd->bnhd', p, vu).reshape(B, N, C)
    return o @ wp + bp


def _run_case(key, B, Dd, Hh, Ww, C, nh):
    kx, kq, kkv, kp, kb = jax.random.split(key, 5)
    x = jax.random.normal(kx, (B, Dd * Hh * Ww, C), jnp.float32)

    # trunc-normal(std=0.02) weights; small non-zero biases to exercise them.
    wq = 0.02 * jax.random.truncated_normal(kq, -2.0, 2.0, (C, C), jnp.float32)
    wkv = 0.02 * jax.random.truncated_normal(kkv, -2.0, 2.0, (C, 2 * C),
                                             jnp.float32)
    wp = 0.02 * jax.random.truncated_normal(kp, -2.0, 2.0, (C, C), jnp.float32)
    biases = 0.02 * jax.random.normal(kb, (4 * C,), jnp.float32)
    bq, bkv, bp = biases[:C], biases[C:3 * C], biases[3 * C:]
    params = (wq, bq, wkv, bkv, wp, bp)

    out = center_attention_3d(x, Dd, Hh, Ww, params, num_heads=nh)
    out = jax.block_until_ready(out)

    ref = reference(x, Dd, Hh, Ww, params, num_heads=nh)
    assert out.shape == (B, Dd * Hh * Ww, C)
    err = float(jnp.max(jnp.abs(out - ref)))
    assert jnp.allclose(out, ref, rtol=5e-3, atol=1e-3), err


if __name__ == "__main__":
    key = jax.random.PRNGKey(0)
    k1, k2 = jax.random.split(key)
    # default single-head config (matches the module default num_heads=1)
    _run_case(k1, B=2, Dd=4, Hh=4, Ww=4, C=32, nh=1)
    # multi-head, lane-dense-C config (exercises the nh>1 selector path)
    _run_case(k2, B=1, Dd=3, Hh=4, Ww=4, C=128, nh=4)
    print("KERNEL_OK")
</pallas_src>

<mosaic_0001>
module attributes {stable_mosaic.version = 11 : i64} {
  func.func @_qkv_kernel(%arg0: i32, %arg1: memref<128x32xf32, #tpu.memory_space<vmem>>, %arg2: memref<32x96xf32, #tpu.memory_space<vmem>>, %arg3: memref<1x96xf32, #tpu.memory_space<vmem>>, %arg4: memref<128x32xf32, #tpu.memory_space<vmem>>, %arg5: memref<128x32xf32, #tpu.memory_space<vmem>>, %arg6: memref<128x32xf32, #tpu.memory_space<vmem>>) attributes {dimension_semantics = [#tpu.dimension_semantics<parallel>], iteration_bounds = array<i64: 1>, scalar_prefetch = 0 : i64, scratch_operands = 0 : i64, tpu.core_type = #tpu.core_type<tc>, window_params = [{transform_indices = @transform_0, window_bounds = array<i64: 128, 32>}, {pipeline_mode = #tpu.pipeline_mode<synchronous>, transform_indices = @transform_1, window_bounds = array<i64: 32, 96>}, {pipeline_mode = #tpu.pipeline_mode<synchronous>, transform_indices = @transform_2, window_bounds = array<i64: 1, 96>}, {transform_indices = @transform_3, window_bounds = array<i64: 128, 32>}, {transform_indices = @transform_4, window_bounds = array<i64: 128, 32>}, {transform_indices = @transform_5, window_bounds = array<i64: 128, 32>}]} {
    %c0 = arith.constant 0 : index
    %c0_0 = arith.constant 0 : index
    %0 = vector.load %arg1[%c0, %c0_0] : memref<128x32xf32, #tpu.memory_space<vmem>>, vector<128x32xf32>
    %c0_1 = arith.constant 0 : index
    %c0_2 = arith.constant 0 : index
    %1 = vector.load %arg2[%c0_1, %c0_2] : memref<32x96xf32, #tpu.memory_space<vmem>>, vector<32x96xf32>
    %cst = arith.constant dense<0.000000e+00> : vector<128x96xf32>
    %2 = tpu.matmul %0, %1, %cst {dimension_numbers = #tpu.dot_dimension_numbers<[1], [0], [0], [1], [0, 0, 1, 1], [], []>} : vector<128x32xf32>, vector<32x96xf32>, vector<128x96xf32> -> vector<128x96xf32>
    %c0_3 = arith.constant 0 : index
    %c0_4 = arith.constant 0 : index
    %3 = vector.load %arg3[%c0_3, %c0_4] : memref<1x96xf32, #tpu.memory_space<vmem>>, vector<1x96xf32>
    %4 = vector.broadcast %3 : vector<1x96xf32> to vector<128x96xf32>
    %5 = arith.addf %2, %4 : vector<128x96xf32>
    %6 = vector.extract_strided_slice %5 {offsets = [0, 0], sizes = [128, 32], strides = [1, 1]} : vector<128x96xf32> to vector<128x32xf32>
    %c0_5 = arith.constant 0 : index
    %c0_6 = arith.constant 0 : index
    %7 = vector.load %arg4[%c0_5, %c0_6] : memref<128x32xf32, #tpu.memory_space<vmem>>, vector<128x32xf32>
    tpu.vector_store %arg4[%c0_5, %c0_6], %6 {strides = array<i32>} : memref<128x32xf32, #tpu.memory_space<vmem>>, vector<128x32xf32>,
    %8 = vector.extract_strided_slice %5 {offsets = [0, 32], sizes = [128, 32], strides = [1, 1]} : vector<128x96xf32> to vector<128x32xf32>
    %c0_7 = arith.constant 0 : index
    %c0_8 = arith.constant 0 : index
    %9 = vector.load %arg5[%c0_7, %c0_8] : memref<128x32xf32, #tpu.memory_space<vmem>>, vector<128x32xf32>
    tpu.vector_store %arg5[%c0_7, %c0_8], %8 {strides = array<i32>} : memref<128x32xf32, #tpu.memory_space<vmem>>, vector<128x32xf32>,
    %10 = vector.extract_strided_slice %5 {offsets = [0, 64], sizes = [128, 32], strides = [1, 1]} : vector<128x96xf32> to vector<128x32xf32>
    %c0_9 = arith.constant 0 : index
    %c0_10 = arith.constant 0 : index
    %11 = vector.load %arg6[%c0_9, %c0_10] : memref<128x32xf32, #tpu.memory_space<vmem>>, vector<128x32xf32>
    tpu.vector_store %arg6[%c0_9, %c0_10], %10 {strides = array<i32>} : memref<128x32xf32, #tpu.memory_space<vmem>>, vector<128x32xf32>,
    return
  }
  func.func @transform_0(%arg0: i32) -> (i32, i32) {
    %c0_i32 = arith.constant 0 : i32
    %c0_i32_0 = arith.constant 0 : i32
    return %arg0, %c0_i32 : i32, i32
  }
  func.func @transform_1(%arg0: i32) -> (i32, i32) {
    %c0_i32 = arith.constant 0 : i32
    %c0_i32_0 = arith.constant 0 : i32
    %c0_i32_1 = arith.constant 0 : i32
    return %c0_i32, %c0_i32_0 : i32, i32
  }
  func.func @transform_2(%arg0: i32) -> (i32, i32) {
    %c0_i32 = arith.constant 0 : i32
    %c0_i32_0 = arith.constant 0 : i32
    %c0_i32_1 = arith.constant 0 : i32
    return %c0_i32, %c0_i32_0 : i32, i32
  }
  func.func @transform_3(%arg0: i32) -> (i32, i32) {
    %c0_i32 = arith.constant 0 : i32
    %c0_i32_0 = arith.constant 0 : i32
    return %arg0, %c0_i32 : i32, i32
  }
  func.func @transform_4(%arg0: i32) -> (i32, i32) {
    %c0_i32 = arith.constant 0 : i32
    %c0_i32_0 = arith.constant 0 : i32
    return %arg0, %c0_i32 : i32, i32
  }
  func.func @transform_5(%arg0: i32) -> (i32, i32) {
    %c0_i32 = arith.constant 0 : i32
    %c0_i32_0 = arith.constant 0 : i32
    return %arg0, %c0_i32 : i32, i32
  }
}

</mosaic_0001>

<bundles_post_ra>
// kernel: tpu_custom_call.1
= control target key start
LH: loop header
LB: loop body
LE: loop exit
PB: predicated region body
PF: predicated region fallthrough
CT: control target
= control target key end

     0   :  { %vm44_vm0 = vcmask 261120   ;;  %s489_s11 = smov 96   ;;  %s490_s15 = smov 64   ;;  %s824_s1 = inlined_call_operand.vmem [shape: f32[32,96], index: 1, kind: input, shape index: {}]   ;;  %s825_s0 = inlined_call_operand.vmem [shape: f32[128,32], index: 0, kind: input, shape index: {}]   ;;  %s826_s2 = inlined_call_operand.vmem [shape: f32[1,96], index: 2, kind: input, shape index: {}]   ;;  %s827_s3 = inlined_call_operand.vmem [shape: f32[128,32], index: 3, kind: output, shape index: {0}]   ;;  %s828_s4 = inlined_call_operand.vmem [shape: f32[128,32], index: 4, kind: output, shape index: {1}]   ;;  %s829_s5 = inlined_call_operand.vmem [shape: f32[128,32], index: 5, kind: output, shape index: {2}]  }
   0x1   :  { %v36_v0 = vld [vmem:[%s824_s1 + $0x18] sm:$0xff]  ;;  %v35_v1 = vld [vmem:[%s824_s1 + $0x10] sm:$0xff]  ;;  %v34_v2 = vld [vmem:[%s824_s1 + $0x8] sm:$0xff] }
   0x2   :  { %447 = vmatprep.subr.mxu0 %v36_v0  ;;  %479 = vmatprep.subr.mxu1 %v36_v0  ;;  %v33_v3 = vld [vmem:[%s824_s1] sm:$0xff]  ;;  %v18_v6 = vld [vmem:[%s825_s0 + $0x8] sm:$0xff]  ;;  %v19_v8 = vld [vmem:[%s825_s0 + $0x10] sm:$0xff] }
   0x3   :  { %448 = vmatpush3.msra.mxu0 %v36_v0  ;;  %483 = vmatpush3.msra.mxu1 %v36_v0  ;;  %v17_v4 = vld [vmem:[%s825_s0] sm:$0xff]  ;;  %v26_v7 = vld [vmem:[%s825_s0 + $0x48] sm:$0xff]  ;;  %v27_v9 = vld [vmem:[%s825_s0 + $0x50] sm:$0xff] }
   0x4   :  { %449 = vmatprep.subr.mxu0 %v35_v1  ;;  %480 = vmatprep.subr.mxu1 %v35_v1  ;;  %v25_v5 = vld [vmem:[%s825_s0 + $0x40] sm:$0xff]  ;;  %v20_v10 = vld [vmem:[%s825_s0 + $0x18] sm:$0xff]  ;;  %v22_v14 = vld [vmem:[%s825_s0 + $0x28] sm:$0xff] }
   0x5   :  { %450 = vmatpush3.msra.mxu0 %v35_v1  ;;  %484 = vmatpush3.msra.mxu1 %v35_v1  ;;  %v28_v11 = vld [vmem:[%s825_s0 + $0x58] sm:$0xff]  ;;  %v21_v12 = vld [vmem:[%s825_s0 + $0x20] sm:$0xff]  ;;  %v30_v15 = vld [vmem:[%s825_s0 + $0x68] sm:$0xff] }
   0x6   :  { %451 = vmatprep.subr.mxu0 %v34_v2  ;;  %481 = vmatprep.subr.mxu1 %v34_v2  ;;  %v29_v13 = vld [vmem:[%s825_s0 + $0x60] sm:$0xff]  ;;  %v23_v16 = vld [vmem:[%s825_s0 + $0x30] sm:$0xff]  ;;  %v24_v18 = vld [vmem:[%s825_s0 + $0x38] sm:$0xff] }
   0x7   :  { %452 = vmatpush3.msra.mxu0 %v34_v2  ;;  %485 = vmatpush3.msra.mxu1 %v34_v2  ;;  %v31_v17 = vld [vmem:[%s825_s0 + $0x70] sm:$0xff]  ;;  %v32_v19 = vld [vmem:[%s825_s0 + $0x78] sm:$0xff]  ;;  %v410_v20 = vld [vmem:[%s826_s2] ss:$0 sm:$0xff] }
   0x8   :  { %453 = vmatprep.subr.mxu0 %v33_v3  ;;  %482 = vmatprep.subr.mxu1 %v33_v3 }
   0x9   :  { %454 = vmatpush3.msra.mxu0 %v33_v3  ;;  %486 = vmatpush3.msra.mxu1 %v33_v3 }
   0xa   :  { %455 = vmatprep.mubr.msk.f32.mxu0 %vm44_vm0, %v17_v4  ;;  %467 = vmatprep.mubr.msk.f32.mxu1 %vm44_vm0, %v25_v5 }
   0xb   :  { %456 = vmatmul.mubr.msk.f32.vlgmr.msra.gmra.mxu0 %vm44_vm0, %v18_v6  ;;  %468 = vmatmul.mubr.msk.f32.vlgmr.msra.gmra.mxu1 %vm44_vm0, %v26_v7 }
   0xc   :  { %458 = vmatprep.mubr.msk.f32.mxu0 %vm44_vm0, %v19_v8  ;;  %470 = vmatprep.mubr.msk.f32.mxu1 %vm44_vm0, %v27_v9 }
   0xf   :  { %459 = vmatmul.mubr.msk.f32.gmra.mxu0 %vm44_vm0, %v20_v10  ;;  %471 = vmatmul.mubr.msk.f32.gmra.mxu1 %vm44_vm0, %v28_v11 }
  0x10   :  { %461 = vmatprep.mubr.msk.f32.mxu0 %vm44_vm0, %v21_v12  ;;  %473 = vmatprep.mubr.msk.f32.mxu1 %vm44_vm0, %v29_v13 }
  0x13   :  { %462 = vmatmul.mubr.msk.f32.gmra.mxu0 %vm44_vm0, %v22_v14  ;;  %474 = vmatmul.mubr.msk.f32.gmra.mxu1 %vm44_vm0, %v30_v15 }
  0x14   :  { %464 = vmatprep.mubr.msk.f32.mxu0 %vm44_vm0, %v23_v16  ;;  %476 = vmatprep.mubr.msk.f32.mxu1 %vm44_vm0, %v31_v17 }
  0x17   :  { %465 = vmatmul.mubr.msk.f32.gmra.mxu0 %vm44_vm0, %v24_v18  ;;  %477 = vmatmul.mubr.msk.f32.gmra.mxu1 %vm44_vm0, %v32_v19 }
  0xcb   :  { %v457_v21 = vpop.f32.mrf.mxu0  ;;  %v469_v22 = vpop.f32.mrf.mxu1 }
  0xcc   :  { %v165_v23 = vadd.f32 %v457_v21, %v410_v20  ;;  %v205_v24 = vadd.f32 %v469_v22, %v410_v20 }
  0xcd   :  { %v159_v25 = vpop.f32.mrf.mxu0  ;;  %v199_v26 = vpop.f32.mrf.mxu1 }
  0xce   :  { %239 = vst.msk [vmem:[%s827_s3 + $0x8] sm:$0xff] %vm44_vm0, %v165_v23  ;;  %247 = vst.msk [vmem:[%s827_s3 + $0x48] sm:$0xff] %vm44_vm0, %v205_v24  ;;  %v160_v27 = vadd.f32 %v410_v20, %v159_v25  ;;  %v200_v28 = vadd.f32 %v410_v20, %v199_v26  ;;  %288 = vrot.lane.b32.xlu1 %v205_v24, %s489_s11  ;;  %272 = vrot.lane.b32.xlu0 %v165_v23, %s489_s11 }
  0xcf   :  { %v460_v29 = vpop.f32.mrf.mxu0  ;;  %v472_v30 = vpop.f32.mrf.mxu1 }
  0xd0   :  { %238 = vst.msk [vmem:[%s827_s3] sm:$0xff] %vm44_vm0, %v160_v27  ;;  %246 = vst.msk [vmem:[%s827_s3 + $0x40] sm:$0xff] %vm44_vm0, %v200_v28  ;;  %v175_v31 = vadd.f32 %v460_v29, %v410_v20  ;;  %v215_v32 = vadd.f32 %v472_v30, %v410_v20 }
  0xd1   :  { %v169_v33 = vpop.f32.mrf.mxu0  ;;  %v209_v34 = vpop.f32.mrf.mxu1 }
  0xd2   :  { %336 = vrot.lane.b32.xlu1 %v165_v23, %s490_s15  ;;  %270 = vrot.lane.b32.xlu0 %v160_v27, %s489_s11  ;;  %241 = vst.msk [vmem:[%s827_s3 + $0x18] sm:$0xff] %vm44_vm0, %v175_v31  ;;  %v170_v35 = vadd.f32 %v410_v20, %v169_v33  ;;  %249 = vst.msk [vmem:[%s827_s3 + $0x58] sm:$0xff] %vm44_vm0, %v215_v32  ;;  %v210_v36 = vadd.f32 %v410_v20, %v209_v34 }
  0xd3   :  { %v463_v37 = vpop.f32.mrf.mxu0  ;;  %v475_v38 = vpop.f32.mrf.mxu1 }
  0xd4   :  { %240 = vst.msk [vmem:[%s827_s3 + $0x10] sm:$0xff] %vm44_vm0, %v170_v35  ;;  %248 = vst.msk [vmem:[%s827_s3 + $0x50] sm:$0xff] %vm44_vm0, %v210_v36  ;;  %v185_v39 = vadd.f32 %v463_v37, %v410_v20  ;;  %v225_v40 = vadd.f32 %v475_v38, %v410_v20 }
  0xd5   :  { %v179_v41 = vpop.f32.mrf.mxu0  ;;  %v219_v42 = vpop.f32.mrf.mxu1 }
  0xd6   :  { %352 = vrot.lane.b32.xlu1 %v205_v24, %s490_s15  ;;  %286 = vrot.lane.b32.xlu0 %v200_v28, %s489_s11  ;;  %243 = vst.msk [vmem:[%s827_s3 + $0x28] sm:$0xff] %vm44_vm0, %v185_v39  ;;  %v180_v43 = vadd.f32 %v410_v20, %v179_v41  ;;  %251 = vst.msk [vmem:[%s827_s3 + $0x68] sm:$0xff] %vm44_vm0, %v225_v40  ;;  %v220_v44 = vadd.f32 %v410_v20, %v219_v42 }
  0xd7   :  { %v466_v45 = vpop.f32.mrf.mxu0  ;;  %v478_v46 = vpop.f32.mrf.mxu1 }
  0xd8   :  { %242 = vst.msk [vmem:[%s827_s3 + $0x20] sm:$0xff] %vm44_vm0, %v180_v43  ;;  %250 = vst.msk [vmem:[%s827_s3 + $0x60] sm:$0xff] %vm44_vm0, %v220_v44  ;;  %v195_v47 = vadd.f32 %v466_v45, %v410_v20  ;;  %v235_v48 = vadd.f32 %v478_v46, %v410_v20 }
  0xd9   :  { %v189_v49 = vpop.f32.mrf.mxu0  ;;  %v229_v50 = vpop.f32.mrf.mxu1 }
  0xda   :  { %276 = vrot.lane.b32.xlu1 %v175_v31, %s489_s11  ;;  %334 = vrot.lane.b32.xlu0 %v160_v27, %s490_s15  ;;  %245 = vst.msk [vmem:[%s827_s3 + $0x38] sm:$0xff] %vm44_vm0, %v195_v47  ;;  %v190_v51 = vadd.f32 %v410_v20, %v189_v49  ;;  %253 = vst.msk [vmem:[%s827_s3 + $0x78] sm:$0xff] %vm44_vm0, %v235_v48  ;;  %v230_v52 = vadd.f32 %v410_v20, %v229_v50 }
  0xdc   :  { %244 = vst.msk [vmem:[%s827_s3 + $0x30] sm:$0xff] %vm44_vm0, %v190_v51  ;;  %252 = vst.msk [vmem:[%s827_s3 + $0x70] sm:$0xff] %vm44_vm0, %v230_v52 }
  0xde   :  { %292 = vrot.lane.b32.xlu1 %v215_v32, %s489_s11  ;;  %350 = vrot.lane.b32.xlu0 %v200_v28, %s490_s15 }
  0xe2   :  { %340 = vrot.lane.b32.xlu1 %v175_v31, %s490_s15  ;;  %290 = vrot.lane.b32.xlu0 %v210_v36, %s489_s11 }
  0xe6   :  { %356 = vrot.lane.b32.xlu1 %v215_v32, %s490_s15  ;;  %338 = vrot.lane.b32.xlu0 %v170_v35, %s490_s15 }
  0xea   :  { %274 = vrot.lane.b32.xlu1 %v170_v35, %s489_s11  ;;  %354 = vrot.lane.b32.xlu0 %v210_v36, %s490_s15 }
  0xee   :  { %280 = vrot.lane.b32.xlu1 %v185_v39, %s489_s11  ;;  %278 = vrot.lane.b32.xlu0 %v180_v43, %s489_s11 }
  0xf2   :  { %296 = vrot.lane.b32.xlu1 %v225_v40, %s489_s11  ;;  %294 = vrot.lane.b32.xlu0 %v220_v44, %s489_s11 }
  0xf6   :  { %344 = vrot.lane.b32.xlu1 %v185_v39, %s490_s15  ;;  %342 = vrot.lane.b32.xlu0 %v180_v43, %s490_s15 }
  0xfa   :  { %360 = vrot.lane.b32.xlu1 %v225_v40, %s490_s15  ;;  %358 = vrot.lane.b32.xlu0 %v220_v44, %s490_s15 }
  0xfe   :  { %284 = vrot.lane.b32.xlu1 %v195_v47, %s489_s11  ;;  %282 = vrot.lane.b32.xlu0 %v190_v51, %s489_s11 }
 0x102   :  { %300 = vrot.lane.b32.xlu1 %v235_v48, %s489_s11  ;;  %298 = vrot.lane.b32.xlu0 %v230_v52, %s489_s11 }
 0x106   :  { %348 = vrot.lane.b32.xlu1 %v195_v47, %s490_s15  ;;  %346 = vrot.lane.b32.xlu0 %v190_v51, %s490_s15 }
 0x10a   :  { %364 = vrot.lane.b32.xlu1 %v235_v48, %s490_s15  ;;  %362 = vrot.lane.b32.xlu0 %v230_v52, %s490_s15 }
 0x140   :  { %v289_v53 = vpop.permute.xlu1 %288  ;;  %v273_v54 = vpop.permute.xlu0 %272 }
 0x141   :  { %327 = vst.msk [vmem:[%s828_s4 + $0x48] sm:$0xff] %vm44_vm0, %v289_v53  ;;  %319 = vst.msk [vmem:[%s828_s4 + $0x8] sm:$0xff] %vm44_vm0, %v273_v54 }
 0x144   :  { %v337_v55 = vpop.permute.xlu1 %336  ;;  %v271_v56 = vpop.permute.xlu0 %270 }
 0x145   :  { %383 = vst.msk [vmem:[%s829_s5 + $0x8] sm:$0xff] %vm44_vm0, %v337_v55  ;;  %318 = vst.msk [vmem:[%s828_s4] sm:$0xff] %vm44_vm0, %v271_v56 }
 0x148   :  { %v353_v57 = vpop.permute.xlu1 %352  ;;  %v287_v58 = vpop.permute.xlu0 %286 }
 0x149   :  { %391 = vst.msk [vmem:[%s829_s5 + $0x48] sm:$0xff] %vm44_vm0, %v353_v57  ;;  %326 = vst.msk [vmem:[%s828_s4 + $0x40] sm:$0xff] %vm44_vm0, %v287_v58 }
 0x14c   :  { %v277_v59 = vpop.permute.xlu1 %276  ;;  %v335_v60 = vpop.permute.xlu0 %334 }
 0x14d   :  { %321 = vst.msk [vmem:[%s828_s4 + $0x18] sm:$0xff] %vm44_vm0, %v277_v59  ;;  %382 = vst.msk [vmem:[%s829_s5] sm:$0xff] %vm44_vm0, %v335_v60 }
 0x150   :  { %v293_v61 = vpop.permute.xlu1 %292  ;;  %v351_v62 = vpop.permute.xlu0 %350 }
 0x151   :  { %329 = vst.msk [vmem:[%s828_s4 + $0x58] sm:$0xff] %vm44_vm0, %v293_v61  ;;  %390 = vst.msk [vmem:[%s829_s5 + $0x40] sm:$0xff] %vm44_vm0, %v351_v62 }
 0x154   :  { %v341_v63 = vpop.permute.xlu1 %340  ;;  %v291_v0 = vpop.permute.xlu0 %290 }
 0x155   :  { %385 = vst.msk [vmem:[%s829_s5 + $0x18] sm:$0xff] %vm44_vm0, %v341_v63  ;;  %328 = vst.msk [vmem:[%s828_s4 + $0x50] sm:$0xff] %vm44_vm0, %v291_v0 }
 0x158   :  { %v357_v1 = vpop.permute.xlu1 %356  ;;  %v339_v2 = vpop.permute.xlu0 %338 }
 0x159   :  { %393 = vst.msk [vmem:[%s829_s5 + $0x58] sm:$0xff] %vm44_vm0, %v357_v1  ;;  %384 = vst.msk [vmem:[%s829_s5 + $0x10] sm:$0xff] %vm44_vm0, %v339_v2 }
 0x15c   :  { %v275_v3 = vpop.permute.xlu1 %274  ;;  %v355_v4 = vpop.permute.xlu0 %354 }
 0x15d   :  { %320 = vst.msk [vmem:[%s828_s4 + $0x10] sm:$0xff] %vm44_vm0, %v275_v3  ;;  %392 = vst.msk [vmem:[%s829_s5 + $0x50] sm:$0xff] %vm44_vm0, %v355_v4 }
 0x160   :  { %v281_v5 = vpop.permute.xlu1 %280  ;;  %v279_v6 = vpop.permute.xlu0 %278 }
 0x161   :  { %323 = vst.msk [vmem:[%s828_s4 + $0x28] sm:$0xff] %vm44_vm0, %v281_v5  ;;  %322 = vst.msk [vmem:[%s828_s4 + $0x20] sm:$0xff] %vm44_vm0, %v279_v6 }
 0x164   :  { %v297_v7 = vpop.permute.xlu1 %296  ;;  %v295_v8 = vpop.permute.xlu0 %294 }
 0x165   :  { %331 = vst.msk [vmem:[%s828_s4 + $0x68] sm:$0xff] %vm44_vm0, %v297_v7  ;;  %330 = vst.msk [vmem:[%s828_s4 + $0x60] sm:$0xff] %vm44_vm0, %v295_v8 }
 0x168   :  { %v345_v9 = vpop.permute.xlu1 %344  ;;  %v343_v10 = vpop.permute.xlu0 %342 }
 0x169   :  { %387 = vst.msk [vmem:[%s829_s5 + $0x28] sm:$0xff] %vm44_vm0, %v345_v9  ;;  %386 = vst.msk [vmem:[%s829_s5 + $0x20] sm:$0xff] %vm44_vm0, %v343_v10 }
 0x16c   :  { %v361_v11 = vpop.permute.xlu1 %360  ;;  %v359_v12 = vpop.permute.xlu0 %358 }
 0x16d   :  { %395 = vst.msk [vmem:[%s829_s5 + $0x68] sm:$0xff] %vm44_vm0, %v361_v11  ;;  %394 = vst.msk [vmem:[%s829_s5 + $0x60] sm:$0xff] %vm44_vm0, %v359_v12 }
 0x170   :  { %v285_v13 = vpop.permute.xlu1 %284  ;;  %v283_v14 = vpop.permute.xlu0 %282 }
 0x171   :  { %325 = vst.msk [vmem:[%s828_s4 + $0x38] sm:$0xff] %vm44_vm0, %v285_v13  ;;  %324 = vst.msk [vmem:[%s828_s4 + $0x30] sm:$0xff] %vm44_vm0, %v283_v14 }
 0x174   :  { %v301_v15 = vpop.permute.xlu1 %300  ;;  %v299_v16 = vpop.permute.xlu0 %298 }
 0x175   :  { %333 = vst.msk [vmem:[%s828_s4 + $0x78] sm:$0xff] %vm44_vm0, %v301_v15  ;;  %332 = vst.msk [vmem:[%s828_s4 + $0x70] sm:$0xff] %vm44_vm0, %v299_v16 }
 0x178   :  { %v349_v17 = vpop.permute.xlu1 %348  ;;  %v347_v18 = vpop.permute.xlu0 %346 }
 0x179   :  { %389 = vst.msk [vmem:[%s829_s5 + $0x38] sm:$0xff] %vm44_vm0, %v349_v17  ;;  %388 = vst.msk [vmem:[%s829_s5 + $0x30] sm:$0xff] %vm44_vm0, %v347_v18 }
 0x17c   :  { %v365_v19 = vpop.permute.xlu1 %364  ;;  %v363_v20 = vpop.permute.xlu0 %362 }
 0x17d   :  { %397 = vst.msk [vmem:[%s829_s5 + $0x78] sm:$0xff] %vm44_vm0, %v365_v19  ;;  %396 = vst.msk [vmem:[%s829_s5 + $0x70] sm:$0xff] %vm44_vm0, %v363_v20 }

</bundles_post_ra>
